<compile_context>
chip_gen: v7x
topology: tpu7x:2x2x1
jax: 0.10.0
libtpu: 0.0.40
codegen_flags: <defaults>
</compile_context>

<pallas_src>
import functools

import jax
import jax.numpy as jnp
from jax.experimental import pallas as pl
from jax.experimental.pallas import tpu as pltpu


# ------------------------------ Pallas kernel -------------------------------

def _fused_conv_bn_relu_kernel(x_ref, w_ref, gb_ref, o_ref, *, n_batch, eps):
    # x_ref:  (N*Cin, HW)   -- NCHW with (N,Cin) and (H,W) each flattened
    # w_ref:  (Cout, Cin)
    # gb_ref: (Cout, 2)     -- column 0 = gamma, column 1 = beta
    # o_ref:  (N*Cout, HW)  -- lane-dense output (HW multiple of 128)
    cout, cin = w_ref.shape
    hw = x_ref.shape[1]

    # Concatenate per-sample (Cin, HW) slabs along lanes -> (Cin, N*HW).
    # Each chunk is a whole number of vregs wide (HW = 256), so the concat is
    # free vreg copies; slices are static and vreg-aligned.
    x_cat = jnp.concatenate(
        [x_ref[pl.ds(n * cin, cin), :] for n in range(n_batch)], axis=1)

    # 1x1 conv as ONE (Cout,Cin)@(Cin,N*HW) matmul.  FLOPs are negligible at
    # Cin=4; the kernel is dispatch/DMA bound, so a single MXU push/drain
    # minimizes the critical path.
    y_cat = jnp.dot(w_ref[...], x_cat, preferred_element_type=jnp.float32)

    # Training-mode BatchNorm batch statistics over (N, H, W): one lane
    # reduction each for sum and sum-of-squares.  Biased variance, clamped
    # >= 0 to guard the E[y^2]-E[y]^2 form against cancellation.
    inv_m = 1.0 / float(n_batch * hw)
    mean = jnp.sum(y_cat, axis=1, keepdims=True) * inv_m
    var = jnp.maximum(
        jnp.sum(y_cat * y_cat, axis=1, keepdims=True) * inv_m - mean * mean,
        0.0)
    inv_std = jax.lax.rsqrt(var + eps)              # EUP slot (free here)
    gamma = gb_ref[:, 0:1]                          # (Cout, 1)
    beta = gb_ref[:, 1:2]                           # (Cout, 1)
    scale = gamma * inv_std                         # (Cout, 1)
    shift = beta - mean * scale                     # (Cout, 1)

    # BN affine + ReLU emitted ONCE on the concatenated activations (single
    # broadcast of scale/shift), then per-sample vreg-aligned stores.
    out_cat = jnp.maximum(y_cat * scale + shift, 0.0)
    for n in range(n_batch):  # static unroll (small N), 256-lane aligned
        o_ref[pl.ds(n * cout, cout), :] = (
            out_cat[:, n * hw:(n + 1) * hw].astype(o_ref.dtype))


# ------------------------------ Host wrapper --------------------------------

@functools.partial(jax.jit, static_argnames=("eps",))
def conv_bn_relu_1x1(x_nchw, weight, gamma, beta, *, eps=1e-5):
    """ConvBnrelu2d_1 forward: 1x1 conv (no bias) -> BN (batch stats) -> ReLU.

    x_nchw: (N, Cin, H, W); weight: (Cout, Cin, 1, 1) PyTorch layout;
    gamma/beta: (Cout,).  Returns (N, Cout, H, W).
    """
    n, cin, h, w = x_nchw.shape
    cout = weight.shape[0]
    hw = h * w

    # Pure contiguous reshapes -- no NCHW<->NHWC transposes, no data movement.
    x2d = x_nchw.reshape(n * cin, hw).astype(jnp.float32)
    w_mat = weight.reshape(cout, cin).astype(jnp.float32)
    # Pack gamma/beta into one operand -> one DMA instead of two.
    gb = jnp.stack(
        [gamma.astype(jnp.float32), beta.astype(jnp.float32)], axis=1)

    # VMEM budget: Pallas double-buffers every BlockSpec (~2x), plus the
    # in-kernel working set (x_cat + y_cat + out_cat ~ 3 * N*Cout*HW f32).
    # Check against the smallest default scoped limit across generations
    # (v5e: 16 MiB; v6e/v7x default 32 MiB; v7x physical 64 MiB).
    io_bytes = 4 * (n * cin * hw + cout * cin + cout * 2 + n * cout * hw)
    work_bytes = 4 * (n * cin * hw + 3 * n * cout * hw)
    assert 2 * io_bytes + work_bytes < 16 * 1024 * 1024, (
        "problem too large for the fused single-step kernel; use the tiled "
        "two-phase path (see TODO)")

    out = pl.pallas_call(
        functools.partial(_fused_conv_bn_relu_kernel, n_batch=n, eps=eps),
        out_shape=jax.ShapeDtypeStruct((n * cout, hw), jnp.float32),
        grid_spec=pltpu.PrefetchScalarGridSpec(
            num_scalar_prefetch=0,
            grid=(1,),
            in_specs=[
                pl.BlockSpec((n * cin, hw), lambda i: (0, 0)),
                pl.BlockSpec((cout, cin), lambda i: (0, 0)),
                pl.BlockSpec((cout, 2), lambda i: (0, 0)),
            ],
            out_specs=pl.BlockSpec((n * cout, hw), lambda i: (0, 0)),
        ),
        compiler_params=pltpu.CompilerParams(
            dimension_semantics=("arbitrary",)),
    )(x2d, w_mat, gb)

    # Pure reshape back to NCHW.
    return out.reshape(n, cout, h, w)


# ------------------------------ Reference & main ----------------------------

def _reference(x_nchw, weight, gamma, beta, eps=1e-5):
    # Pure-JAX reference of the PyTorch forward (training-mode BN).
    w_mat = weight.reshape(weight.shape[0], weight.shape[1])  # (Cout, Cin)
    y = jnp.einsum("nchw,oc->nohw", x_nchw, w_mat)
    mean = y.mean(axis=(0, 2, 3), keepdims=True)
    var = y.var(axis=(0, 2, 3), keepdims=True)  # biased variance
    yhat = (y - mean) * jax.lax.rsqrt(var + eps)
    yhat = yhat * gamma.reshape(1, -1, 1, 1) + beta.reshape(1, -1, 1, 1)
    return jnp.maximum(yhat, 0.0)


if __name__ == "__main__":
    key = jax.random.PRNGKey(0)
    k_x, k_w = jax.random.split(key)

    N, Cin, H, W = 2, 4, 16, 16
    Cout = 8  # ConvBnrelu2d_1(in_channels=4, out_channels=8) with defaults
    KS = 1    # kernel_size=1, padding=0, stride=1, groups=1, bias=False

    x = jax.random.normal(k_x, (N, Cin, H, W), dtype=jnp.float32)

    # Deterministic parameter init matching the module's __init__:
    #   conv.weight: xavier_uniform_, shape (Cout, Cin, 1, 1)
    #   bn.weight = 1, bn.bias = 0
    fan_in, fan_out = Cin * KS * KS, Cout * KS * KS
    bound = (6.0 / (fan_in + fan_out)) ** 0.5
    conv_w = jax.random.uniform(
        k_w, (Cout, Cin, KS, KS), minval=-bound, maxval=bound,
        dtype=jnp.float32)
    gamma = jnp.ones((Cout,), jnp.float32)
    beta = jnp.zeros((Cout,), jnp.float32)

    out = conv_bn_relu_1x1(x, conv_w, gamma, beta)
    out = jax.block_until_ready(out)

    ref = _reference(x, conv_w, gamma, beta)
    assert out.shape == (N, Cout, H, W)
    assert jnp.allclose(out, ref, atol=1e-4, rtol=1e-4), (
        float(jnp.max(jnp.abs(out - ref))))

    print("KERNEL_OK")
</pallas_src>

<mosaic_0001>
module attributes {stable_mosaic.version = 11 : i64} {
  func.func @_fused_conv_bn_relu_kernel(%arg0: i32, %arg1: memref<8x256xf32, #tpu.memory_space<vmem>>, %arg2: memref<8x4xf32, #tpu.memory_space<vmem>>, %arg3: memref<8x2xf32, #tpu.memory_space<vmem>>, %arg4: memref<16x256xf32, #tpu.memory_space<vmem>>) attributes {dimension_semantics = [#tpu.dimension_semantics<arbitrary>], iteration_bounds = array<i64: 1>, scalar_prefetch = 0 : i64, scratch_operands = 0 : i64, tpu.core_type = #tpu.core_type<tc>, window_params = [{pipeline_mode = #tpu.pipeline_mode<synchronous>, transform_indices = @transform_0, window_bounds = array<i64: 8, 256>}, {pipeline_mode = #tpu.pipeline_mode<synchronous>, transform_indices = @transform_1, window_bounds = array<i64: 8, 4>}, {pipeline_mode = #tpu.pipeline_mode<synchronous>, transform_indices = @transform_2, window_bounds = array<i64: 8, 2>}, {pipeline_mode = #tpu.pipeline_mode<synchronous>, transform_indices = @transform_3, window_bounds = array<i64: 16, 256>}]} {
    %c0 = arith.constant 0 : index
    %c0_0 = arith.constant 0 : index
    %0 = vector.load %arg1[%c0, %c0_0] : memref<8x256xf32, #tpu.memory_space<vmem>>, vector<4x256xf32>
    %c4 = arith.constant 4 : index
    %c0_1 = arith.constant 0 : index
    %1 = vector.load %arg1[%c4, %c0_1] : memref<8x256xf32, #tpu.memory_space<vmem>>, vector<4x256xf32>
    %2 = tpu.concatenate %0, %1 in 1 : vector<4x256xf32>, vector<4x256xf32> -> vector<4x512xf32>
    %c0_2 = arith.constant 0 : index
    %c0_3 = arith.constant 0 : index
    %3 = vector.load %arg2[%c0_2, %c0_3] : memref<8x4xf32, #tpu.memory_space<vmem>>, vector<8x4xf32>
    %cst = arith.constant dense<0.000000e+00> : vector<8x512xf32>
    %4 = tpu.matmul %3, %2, %cst {dimension_numbers = #tpu.dot_dimension_numbers<[1], [0], [0], [1], [0, 0, 1, 1], [], []>} : vector<8x4xf32>, vector<4x512xf32>, vector<8x512xf32> -> vector<8x512xf32>
    %cst_4 = arith.constant dense<0.000000e+00> : vector<8xf32>
    %5 = vector.multi_reduction <add>, %4, %cst_4 [1] : vector<8x512xf32> to vector<8xf32>
    %6 = vector.shape_cast %5 : vector<8xf32> to vector<8x1xf32>
    %cst_5 = arith.constant 0.001953125 : f32
    %7 = vector.broadcast %cst_5 : f32 to vector<8x1xf32>
    %8 = arith.mulf %6, %7 : vector<8x1xf32>
    %9 = arith.mulf %4, %4 : vector<8x512xf32>
    %cst_6 = arith.constant dense<0.000000e+00> : vector<8xf32>
    %10 = vector.multi_reduction <add>, %9, %cst_6 [1] : vector<8x512xf32> to vector<8xf32>
    %11 = vector.shape_cast %10 : vector<8xf32> to vector<8x1xf32>
    %cst_7 = arith.constant 0.001953125 : f32
    %12 = vector.broadcast %cst_7 : f32 to vector<8x1xf32>
    %13 = arith.mulf %11, %12 : vector<8x1xf32>
    %14 = arith.mulf %8, %8 : vector<8x1xf32>
    %15 = arith.subf %13, %14 : vector<8x1xf32>
    %cst_8 = arith.constant 0.000000e+00 : f32
    %16 = vector.broadcast %cst_8 : f32 to vector<8x1xf32>
    %17 = arith.maximumf %15, %16 : vector<8x1xf32>
    %cst_9 = arith.constant 9.99999974E-6 : f32
    %18 = vector.broadcast %cst_9 : f32 to vector<8x1xf32>
    %19 = arith.addf %17, %18 : vector<8x1xf32>
    %20 = math.rsqrt %19 : vector<8x1xf32>
    %c0_10 = arith.constant 0 : index
    %c0_11 = arith.constant 0 : index
    %21 = vector.load %arg3[%c0_10, %c0_11] : memref<8x2xf32, #tpu.memory_space<vmem>>, vector<8x1xf32>
    %c0_12 = arith.constant 0 : index
    %c1 = arith.constant 1 : index
    %22 = vector.load %arg3[%c0_12, %c1] : memref<8x2xf32, #tpu.memory_space<vmem>>, vector<8x1xf32>
    %23 = arith.mulf %21, %20 : vector<8x1xf32>
    %24 = arith.mulf %8, %23 : vector<8x1xf32>
    %25 = arith.subf %22, %24 : vector<8x1xf32>
    %26 = vector.broadcast %23 : vector<8x1xf32> to vector<8x512xf32>
    %27 = arith.mulf %4, %26 : vector<8x512xf32>
    %28 = vector.broadcast %25 : vector<8x1xf32> to vector<8x512xf32>
    %29 = arith.addf %27, %28 : vector<8x512xf32>
    %cst_13 = arith.constant 0.000000e+00 : f32
    %30 = vector.broadcast %cst_13 : f32 to vector<8x512xf32>
    %31 = arith.maximumf %29, %30 : vector<8x512xf32>
    %32 = vector.extract_strided_slice %31 {offsets = [0, 0], sizes = [8, 256], strides = [1, 1]} : vector<8x512xf32> to vector<8x256xf32>
    %c0_14 = arith.constant 0 : index
    %c0_15 = arith.constant 0 : index
    %33 = vector.load %arg4[%c0_14, %c0_15] : memref<16x256xf32, #tpu.memory_space<vmem>>, vector<8x256xf32>
    tpu.vector_store %arg4[%c0_14, %c0_15], %32 {strides = array<i32>} : memref<16x256xf32, #tpu.memory_space<vmem>>, vector<8x256xf32>,
    %34 = vector.extract_strided_slice %31 {offsets = [0, 256], sizes = [8, 256], strides = [1, 1]} : vector<8x512xf32> to vector<8x256xf32>
    %c8 = arith.constant 8 : index
    %c0_16 = arith.constant 0 : index
    %35 = vector.load %arg4[%c8, %c0_16] : memref<16x256xf32, #tpu.memory_space<vmem>>, vector<8x256xf32>
    tpu.vector_store %arg4[%c8, %c0_16], %34 {strides = array<i32>} : memref<16x256xf32, #tpu.memory_space<vmem>>, vector<8x256xf32>,
    return
  }
  func.func @transform_0(%arg0: i32) -> (i32, i32) {
    %c0_i32 = arith.constant 0 : i32
    %c0_i32_0 = arith.constant 0 : i32
    %c0_i32_1 = arith.constant 0 : i32
    return %c0_i32, %c0_i32_0 : i32, i32
  }
  func.func @transform_1(%arg0: i32) -> (i32, i32) {
    %c0_i32 = arith.constant 0 : i32
    %c0_i32_0 = arith.constant 0 : i32
    %c0_i32_1 = arith.constant 0 : i32
    return %c0_i32, %c0_i32_0 : i32, i32
  }
  func.func @transform_2(%arg0: i32) -> (i32, i32) {
    %c0_i32 = arith.constant 0 : i32
    %c0_i32_0 = arith.constant 0 : i32
    %c0_i32_1 = arith.constant 0 : i32
    return %c0_i32, %c0_i32_0 : i32, i32
  }
  func.func @transform_3(%arg0: i32) -> (i32, i32) {
    %c0_i32 = arith.constant 0 : i32
    %c0_i32_0 = arith.constant 0 : i32
    %c0_i32_1 = arith.constant 0 : i32
    return %c0_i32, %c0_i32_0 : i32, i32
  }
}

</mosaic_0001>

<bundles_post_ra>
// kernel: conv_bn_relu_1x1.1
= control target key start
LH: loop header
LB: loop body
LE: loop exit
PB: predicated region body
PF: predicated region fallthrough
CT: control target
= control target key end

     0   :  { %vm27_vm0 = vcmask 1043456   ;;  %v253_v2 = vmov 0.0   ;;  %vm23_vm1 = vcmask 31744   ;;  %v254_v22 = vmov 0   ;;  %s256_s22 = smov 1   ;;  %s311_s0 = inlined_call_operand.vmem [shape: f32[8,256], index: 0, kind: input, shape index: {}]   ;;  %s312_s1 = inlined_call_operand.vmem [shape: f32[8,4], index: 1, kind: input, shape index: {}]   ;;  %s313_s2 = inlined_call_operand.vmem [shape: f32[8,2], index: 2, kind: input, shape index: {}]   ;;  %s314_s3 = inlined_call_operand.vmem [shape: f32[16,256], index: 3, kind: output, shape index: {}]  }
   0x1   :  { %v15_v0 = vld [vmem:[%s311_s0 + $0x8] sm:$0xf]  ;;  %v14_v1 = vld [vmem:[%s311_s0] sm:$0xf]  ;;  %102 = vmatprep.mubr.f32.mxu0 %v253_v2  ;;  %173 = vmatprep.mubr.f32.mxu1 %v253_v2  ;;  %v17_v4 = vld [vmem:[%s311_s0 + $0x8] sm:$0xf0] }
   0x2   :  { %v22_v3 = vld [vmem:[%s312_s1] sm:$0xff]  ;;  %239 = vmatprep.subr.msk.mxu0 %vm27_vm0, %v15_v0  ;;  %v21_v6 = vrot.slane %v17_v4, 4  ;;  %249 = vset.pattern.permute.xlu1 %v254_v22  ;;  %v255_v31 = vmov 1  }
   0x3   :  { %v16_v5 = vld [vmem:[%s311_s0] sm:$0xf0]  ;;  %240 = vmatpush1.msk.msra.mxu0 %vm27_vm0, %v14_v1  ;;  %250 = vset.pattern.permute.xlu0 %v255_v31 }
   0x4   :  { %v20_v7 = vrot.slane %v16_v5, 4  ;;  %241 = vmatmul.mubr.msk.f32.vlgmr.msra.gmra.mrb[0].mxu0 %vm23_vm1, %v22_v3  ;;  %242 = vmatprep.subr.msk.mxu1 %vm27_vm0, %v21_v6  ;;  %v201_v32 = vld [vmem:[%s313_s2] sm:$0xff] }
   0x6   :  { %243 = vmatpush1.msk.msra.mxu1 %vm27_vm0, %v20_v7 }
   0x7   :  { %244 = vmatmul.mubr.msk.f32.vlgmr.msra.gmra.mrb[0].mxu1 %vm23_vm1, %v22_v3 }
  0xd7   :  { %v104_v8 = vpop.f32.mrb[0].mxu0 }
  0xd8   :  { %v186_v9 = vmul.f32 %v104_v8, %v104_v8  ;;  %v106_v10 = vpop.f32.mrb[1].mxu0 }
  0xd9   :  { %v180_v11 = vadd.f32 %v106_v10, %v104_v8  ;;  %v187_v12 = vmul.f32 %v106_v10, %v106_v10 }
  0xda   :  { %v175_v13 = vpop.f32.mrb[0].mxu1 }
  0xdb   :  { %v190_v14 = vadd.f32 %v187_v12, %v186_v9  ;;  %v188_v15 = vmul.f32 %v175_v13, %v175_v13  ;;  %v177_v16 = vpop.f32.mrb[1].mxu1  ;;  %v181_v17 = vadd.f32 %v180_v11, %v175_v13 }
  0xdc   :  { %v189_v18 = vmul.f32 %v177_v16, %v177_v16 }
  0xdd   :  { %v182_v19 = vadd.f32 %v181_v17, %v177_v16  ;;  %v191_v20 = vadd.f32 %v190_v14, %v188_v15 }
  0xdf   :  { %183 = vadd.xlane.f32.xlu0 %v182_v19  ;;  %v192_v21 = vadd.f32 %v191_v20, %v189_v18 }
  0xe3   :  { %193 = vadd.xlane.f32.xlu0 %v192_v21 }
 0x16c   :  { %v184_v23 = vpop.xlane.xlu0 %183 }
 0x16d   :  { %v185_v24 = vmul.f32 0.001953125, %v184_v23 }
 0x16f   :  { %v196_v26 = vmul.f32 %v185_v24, %v185_v24 }
 0x170   :  { %v194_v25 = vpop.xlane.xlu0 %193 }
 0x171   :  { %v195_v27 = vmul.f32 0.001953125, %v194_v25 }
 0x173   :  { %v197_v28 = vsub.f32 %v195_v27, %v196_v26 }
 0x175   :  { %v198_v29 = vmax.f32 %v197_v28, 0.0 }
 0x177   :  { %v199_v30 = vadd.f32 1e-05, %v198_v29 }
 0x179   :  { %251 = vrsqrt.f32 %v199_v30 }
 0x183   :  { %v252_v33 = vpop.eup %251 }
 0x184   :  { %v202_v34 = vmul.f32 %v252_v33, %v201_v32 }
 0x186   :  { %v203_v35 = vmul.f32 %v202_v34, %v185_v24 }
 0x188   :  { %205 = vrot.lane.b32.xlu1 %v203_v35, %s256_s22 }
 0x18c   :  { %211 = vperm.xlu1 %249, %v202_v34  }
 0x1fa   :  { %v206_v36 = vpop.permute.xlu1 %205 }
 0x1fb   :  { %v208_v37 = vsub.f32 %v201_v32, %v206_v36 }
 0x1fd   :  { %220 = vperm.xlu0 %250, %v208_v37  }
 0x20b   :  { %v212_v38 = vpop.permute.xlu1 %211 }
 0x20c   :  { %v214_v39 = vmul.f32 %v212_v38, %v104_v8  ;;  %v215_v40 = vmul.f32 %v212_v38, %v106_v10  ;;  %v216_v41 = vmul.f32 %v212_v38, %v175_v13  ;;  %v217_v42 = vmul.f32 %v212_v38, %v177_v16 }
 0x27c   :  { %v221_v43 = vpop.permute.xlu0 %220 }
 0x27d   :  { %v223_v44 = vadd.f32 %v221_v43, %v214_v39  ;;  %v224_v45 = vadd.f32 %v221_v43, %v215_v40  ;;  %v225_v46 = vadd.f32 %v221_v43, %v216_v41  ;;  %v226_v47 = vadd.f32 %v221_v43, %v217_v42 }
 0x27f   :  { %v227_v48 = vmax.f32 %v223_v44, 0.0  ;;  %v228_v49 = vmax.f32 %v224_v45, 0.0  ;;  %v229_v50 = vmax.f32 %v225_v46, 0.0  ;;  %v230_v51 = vmax.f32 %v226_v47, 0.0 }
 0x281   :  { %231 = vst [vmem:[%s314_s3] sm:$0xff] %v227_v48  ;;  %232 = vst [vmem:[%s314_s3 + $0x8] sm:$0xff] %v228_v49 }
 0x282   :  { %233 = vst [vmem:[%s314_s3 + $0x10] sm:$0xff] %v229_v50  ;;  %234 = vst [vmem:[%s314_s3 + $0x18] sm:$0xff] %v230_v51 }

</bundles_post_ra>
